<compile_context>
chip_gen: v7x
topology: tpu7x:2x2x1
jax: 0.10.0
libtpu: 0.0.40
codegen_flags: <defaults>
</compile_context>

<pallas_src>
import functools

import jax
import jax.numpy as jnp
from jax.experimental import pallas as pl
from jax.experimental.pallas import tpu as pltpu


# ---------------- configuration (small, consistent with the module) ---------
BATCH = 2
SEQ = 16
QUERY_DIM = 32                   # query_dim
NHEADS = 2                       # nheads
HEAD_DIM = 16                    # head_dim
INNER_DIM = NHEADS * HEAD_DIM    # to_q/to_k/to_v output dim (== 32)
OUT_DIM = QUERY_DIM              # out_dim defaults to query_dim
SCALE = HEAD_DIM ** (-0.5)       # scale_qk=True -> 1/sqrt(head_dim)


# ---------------- Pallas kernel ---------------------------------------------
def _attention_kernel(x_ref, wqkv_ref, wo_ref, bo_ref, o_ref, *,
                      batch, seq, nheads, head_dim):
    # x_ref    : [B*S, C]          (all batches, single invocation, no grid)
    # wqkv_ref : [C, 3*inner]      (wq*scale | wk | wv, fused)
    # wo_ref   : [inner, OUT_DIM]
    # bo_ref   : [1, OUT_DIM]
    # o_ref    : [B*S, OUT_DIM]
    inner = nheads * head_dim

    x = x_ref[...]
    # One fused QKV projection on the MXU (replaces three 32-wide matmuls).
    qkv = jnp.dot(x, wqkv_ref[...], preferred_element_type=jnp.float32)
    # Split tokens back into (batch, seq): sublane-major split, no lane moves.
    qkv = qkv.reshape(batch, seq, 3 * inner)
    q = qkv[..., 0 * inner:1 * inner]      # scale already folded into weights
    k = qkv[..., 1 * inner:2 * inner]
    v = qkv[..., 2 * inner:3 * inner]

    # Heads: short static loop; each iteration is batched over B via einsum
    # contracting on the last dims (no explicit k transpose / XLU vxpose).
    head_outs = []
    for h in range(nheads):
        lo = h * head_dim
        hi = lo + head_dim
        qh = q[..., lo:hi]                 # [B, S, D]
        kh = k[..., lo:hi]
        vh = v[..., lo:hi]
        s = jnp.einsum("bqd,bkd->bqk", qh, kh,
                       preferred_element_type=jnp.float32)     # [B, S, S]
        s = s - jnp.max(s, axis=-1, keepdims=True)
        p = jnp.exp(s)
        p = p * pl.reciprocal(jnp.sum(p, axis=-1, keepdims=True), approx=True)
        head_outs.append(jnp.einsum("bqk,bkd->bqd", p, vh,
                                    preferred_element_type=jnp.float32))
    attn = jnp.concatenate(head_outs, axis=-1)                 # [B, S, inner]
    attn = attn.reshape(batch * seq, inner)

    # Output projection (out_bias=True).
    out = jnp.dot(attn, wo_ref[...], preferred_element_type=jnp.float32)
    out = out + bo_ref[...]
    # TODO(synk): OUT_DIM=32 < 128 lanes -> masked stores on 4 vregs; packing to
    # an (8,128) lane-dense slab needs a sublane->lane relayout that costs about
    # as much as it saves at this tiny size, so the natural layout is kept.
    o_ref[...] = out.astype(o_ref.dtype)


def attention_pallas(x, wq, wk, wv, wo, bo):
    """x: [B, S, QUERY_DIM]; weights pre-transposed to [in_dim, out_dim]."""
    B, S, C = x.shape
    # Trace-time prep: fold the qk scale into wq and fuse the three projections.
    wqkv = jnp.concatenate([wq * SCALE, wk, wv], axis=1)       # [C, 3*inner]
    x2d = x.reshape(B * S, C)
    bo2d = bo.reshape(1, OUT_DIM)

    kernel = functools.partial(_attention_kernel, batch=B, seq=S,
                               nheads=NHEADS, head_dim=HEAD_DIM)
    vmem_spec = pl.BlockSpec(memory_space=pltpu.MemorySpace.VMEM)
    out2d = pl.pallas_call(
        kernel,
        out_shape=jax.ShapeDtypeStruct((B * S, OUT_DIM), x.dtype),
        in_specs=[vmem_spec, vmem_spec, vmem_spec, vmem_spec],
        out_specs=vmem_spec,
    )(x2d, wqkv, wo, bo2d)
    return out2d.reshape(B, S, OUT_DIM)


# ---------------- pure-JAX reference (mirrors the torch forward) -------------
def attention_ref(x, wq, wk, wv, wo, bo):
    q = x @ wq
    k = x @ wk
    v = x @ wv
    B, S, _ = q.shape

    def split_heads(t):
        return t.reshape(B, S, NHEADS, HEAD_DIM).transpose(0, 2, 1, 3)

    qh, kh, vh = split_heads(q), split_heads(k), split_heads(v)
    scores = jnp.einsum("bhqd,bhkd->bhqk", qh, kh) * SCALE
    probs = jax.nn.softmax(scores, axis=-1)
    out = jnp.einsum("bhqk,bhkd->bhqd", probs, vh)
    out = out.transpose(0, 2, 1, 3).reshape(B, S, INNER_DIM)
    return out @ wo + bo


# ---------------- main --------------------------------------------------------
if __name__ == "__main__":
    key = jax.random.PRNGKey(0)
    kx, kq, kk, kv, ko, kb = jax.random.split(key, 6)

    x = jax.random.normal(kx, (BATCH, SEQ, QUERY_DIM), dtype=jnp.float32)

    # deterministic synthetic parameters; stored as [in_dim, out_dim]
    wq = jax.random.normal(kq, (QUERY_DIM, INNER_DIM), dtype=jnp.float32) * 0.05
    wk = jax.random.normal(kk, (QUERY_DIM, INNER_DIM), dtype=jnp.float32) * 0.05
    wv = jax.random.normal(kv, (QUERY_DIM, INNER_DIM), dtype=jnp.float32) * 0.05
    wo = jax.random.normal(ko, (INNER_DIM, OUT_DIM), dtype=jnp.float32) * 0.05
    bo = jax.random.normal(kb, (OUT_DIM,), dtype=jnp.float32) * 0.05

    out = attention_pallas(x, wq, wk, wv, wo, bo)
    out = jax.block_until_ready(out)

    ref = attention_ref(x, wq, wk, wv, wo, bo)
    assert out.shape == (BATCH, SEQ, OUT_DIM)
    # tolerance relaxed slightly vs 1e-5 because of pl.reciprocal(approx=True)
    assert jnp.allclose(out, ref, atol=1e-3, rtol=1e-3), "mismatch vs reference"

    print("KERNEL_OK")
</pallas_src>

<mosaic_0001>
module attributes {stable_mosaic.version = 11 : i64} {
  func.func @_attention_kernel(%arg0: memref<32x32xf32, #tpu.memory_space<vmem>>, %arg1: memref<32x96xf32, #tpu.memory_space<vmem>>, %arg2: memref<32x32xf32, #tpu.memory_space<vmem>>, %arg3: memref<1x32xf32, #tpu.memory_space<vmem>>, %arg4: memref<32x32xf32, #tpu.memory_space<vmem>>) attributes {dimension_semantics = [], scalar_prefetch = 0 : i64, scratch_operands = 0 : i64, tpu.core_type = #tpu.core_type<tc>} {
    %c0 = arith.constant 0 : index
    %c0_0 = arith.constant 0 : index
    %0 = vector.load %arg0[%c0, %c0_0] : memref<32x32xf32, #tpu.memory_space<vmem>>, vector<32x32xf32>
    %c0_1 = arith.constant 0 : index
    %c0_2 = arith.constant 0 : index
    %1 = vector.load %arg1[%c0_1, %c0_2] : memref<32x96xf32, #tpu.memory_space<vmem>>, vector<32x96xf32>
    %cst = arith.constant dense<0.000000e+00> : vector<32x96xf32>
    %2 = tpu.matmul %0, %1, %cst {dimension_numbers = #tpu.dot_dimension_numbers<[1], [0], [0], [1], [0, 0, 1, 1], [], []>} : vector<32x32xf32>, vector<32x96xf32>, vector<32x96xf32> -> vector<32x96xf32>
    %3 = vector.shape_cast %2 : vector<32x96xf32> to vector<2x16x96xf32>
    %4 = vector.extract_strided_slice %3 {offsets = [0, 0, 0], sizes = [2, 16, 32], strides = [1, 1, 1]} : vector<2x16x96xf32> to vector<2x16x32xf32>
    %5 = vector.extract_strided_slice %3 {offsets = [0, 0, 32], sizes = [2, 16, 32], strides = [1, 1, 1]} : vector<2x16x96xf32> to vector<2x16x32xf32>
    %6 = vector.extract_strided_slice %3 {offsets = [0, 0, 64], sizes = [2, 16, 32], strides = [1, 1, 1]} : vector<2x16x96xf32> to vector<2x16x32xf32>
    %7 = vector.extract_strided_slice %4 {offsets = [0, 0, 0], sizes = [2, 16, 16], strides = [1, 1, 1]} : vector<2x16x32xf32> to vector<2x16x16xf32>
    %8 = vector.extract_strided_slice %5 {offsets = [0, 0, 0], sizes = [2, 16, 16], strides = [1, 1, 1]} : vector<2x16x32xf32> to vector<2x16x16xf32>
    %9 = vector.extract_strided_slice %6 {offsets = [0, 0, 0], sizes = [2, 16, 16], strides = [1, 1, 1]} : vector<2x16x32xf32> to vector<2x16x16xf32>
    "tpu.trace_start"() <{level = 10 : i32, message = "bqd,bkd->bqk"}> : () -> ()
    %cst_3 = arith.constant dense<0.000000e+00> : vector<2x16x16xf32>
    %10 = tpu.matmul %7, %8, %cst_3 {dimension_numbers = #tpu.dot_dimension_numbers<[2], [2], [1], [1], [0, 0, 0, 1, 1, 1], [0], [0]>} : vector<2x16x16xf32>, vector<2x16x16xf32>, vector<2x16x16xf32> -> vector<2x16x16xf32>
    "tpu.trace_stop"() : () -> ()
    %cst_4 = arith.constant dense<0xFF800000> : vector<2x16xf32>
    %11 = vector.multi_reduction <maximumf>, %10, %cst_4 [2] : vector<2x16x16xf32> to vector<2x16xf32>
    %12 = vector.shape_cast %11 : vector<2x16xf32> to vector<2x16x1xf32>
    %13 = vector.broadcast %12 : vector<2x16x1xf32> to vector<2x16x16xf32>
    %14 = arith.subf %10, %13 : vector<2x16x16xf32>
    %15 = math.exp %14 : vector<2x16x16xf32>
    %cst_5 = arith.constant dense<0.000000e+00> : vector<2x16xf32>
    %16 = vector.multi_reduction <add>, %15, %cst_5 [2] : vector<2x16x16xf32> to vector<2x16xf32>
    %17 = vector.shape_cast %16 : vector<2x16xf32> to vector<2x16x1xf32>
    %18 = tpu.reciprocal %17 {approx = true} : vector<2x16x1xf32> -> vector<2x16x1xf32>
    %19 = vector.broadcast %18 : vector<2x16x1xf32> to vector<2x16x16xf32>
    %20 = arith.mulf %15, %19 : vector<2x16x16xf32>
    "tpu.trace_start"() <{level = 10 : i32, message = "bqk,bkd->bqd"}> : () -> ()
    %cst_6 = arith.constant dense<0.000000e+00> : vector<2x16x16xf32>
    %21 = tpu.matmul %20, %9, %cst_6 {dimension_numbers = #tpu.dot_dimension_numbers<[2], [1], [1], [2], [0, 0, 0, 1, 1, 2], [0], [0]>} : vector<2x16x16xf32>, vector<2x16x16xf32>, vector<2x16x16xf32> -> vector<2x16x16xf32>
    "tpu.trace_stop"() : () -> ()
    %22 = vector.extract_strided_slice %4 {offsets = [0, 0, 16], sizes = [2, 16, 16], strides = [1, 1, 1]} : vector<2x16x32xf32> to vector<2x16x16xf32>
    %23 = vector.extract_strided_slice %5 {offsets = [0, 0, 16], sizes = [2, 16, 16], strides = [1, 1, 1]} : vector<2x16x32xf32> to vector<2x16x16xf32>
    %24 = vector.extract_strided_slice %6 {offsets = [0, 0, 16], sizes = [2, 16, 16], strides = [1, 1, 1]} : vector<2x16x32xf32> to vector<2x16x16xf32>
    "tpu.trace_start"() <{level = 10 : i32, message = "bqd,bkd->bqk"}> : () -> ()
    %cst_7 = arith.constant dense<0.000000e+00> : vector<2x16x16xf32>
    %25 = tpu.matmul %22, %23, %cst_7 {dimension_numbers = #tpu.dot_dimension_numbers<[2], [2], [1], [1], [0, 0, 0, 1, 1, 1], [0], [0]>} : vector<2x16x16xf32>, vector<2x16x16xf32>, vector<2x16x16xf32> -> vector<2x16x16xf32>
    "tpu.trace_stop"() : () -> ()
    %cst_8 = arith.constant dense<0xFF800000> : vector<2x16xf32>
    %26 = vector.multi_reduction <maximumf>, %25, %cst_8 [2] : vector<2x16x16xf32> to vector<2x16xf32>
    %27 = vector.shape_cast %26 : vector<2x16xf32> to vector<2x16x1xf32>
    %28 = vector.broadcast %27 : vector<2x16x1xf32> to vector<2x16x16xf32>
    %29 = arith.subf %25, %28 : vector<2x16x16xf32>
    %30 = math.exp %29 : vector<2x16x16xf32>
    %cst_9 = arith.constant dense<0.000000e+00> : vector<2x16xf32>
    %31 = vector.multi_reduction <add>, %30, %cst_9 [2] : vector<2x16x16xf32> to vector<2x16xf32>
    %32 = vector.shape_cast %31 : vector<2x16xf32> to vector<2x16x1xf32>
    %33 = tpu.reciprocal %32 {approx = true} : vector<2x16x1xf32> -> vector<2x16x1xf32>
    %34 = vector.broadcast %33 : vector<2x16x1xf32> to vector<2x16x16xf32>
    %35 = arith.mulf %30, %34 : vector<2x16x16xf32>
    "tpu.trace_start"() <{level = 10 : i32, message = "bqk,bkd->bqd"}> : () -> ()
    %cst_10 = arith.constant dense<0.000000e+00> : vector<2x16x16xf32>
    %36 = tpu.matmul %35, %24, %cst_10 {dimension_numbers = #tpu.dot_dimension_numbers<[2], [1], [1], [2], [0, 0, 0, 1, 1, 2], [0], [0]>} : vector<2x16x16xf32>, vector<2x16x16xf32>, vector<2x16x16xf32> -> vector<2x16x16xf32>
    "tpu.trace_stop"() : () -> ()
    %37 = tpu.concatenate %21, %36 in 2 : vector<2x16x16xf32>, vector<2x16x16xf32> -> vector<2x16x32xf32>
    %38 = vector.shape_cast %37 : vector<2x16x32xf32> to vector<32x32xf32>
    %c0_11 = arith.constant 0 : index
    %c0_12 = arith.constant 0 : index
    %39 = vector.load %arg2[%c0_11, %c0_12] : memref<32x32xf32, #tpu.memory_space<vmem>>, vector<32x32xf32>
    %cst_13 = arith.constant dense<0.000000e+00> : vector<32x32xf32>
    %40 = tpu.matmul %38, %39, %cst_13 {dimension_numbers = #tpu.dot_dimension_numbers<[1], [0], [0], [1], [0, 0, 1, 1], [], []>} : vector<32x32xf32>, vector<32x32xf32>, vector<32x32xf32> -> vector<32x32xf32>
    %c0_14 = arith.constant 0 : index
    %c0_15 = arith.constant 0 : index
    %41 = vector.load %arg3[%c0_14, %c0_15] : memref<1x32xf32, #tpu.memory_space<vmem>>, vector<1x32xf32>
    %42 = vector.broadcast %41 : vector<1x32xf32> to vector<32x32xf32>
    %43 = arith.addf %40, %42 : vector<32x32xf32>
    %c0_16 = arith.constant 0 : index
    %c0_17 = arith.constant 0 : index
    %44 = vector.load %arg4[%c0_16, %c0_17] : memref<32x32xf32, #tpu.memory_space<vmem>>, vector<32x32xf32>
    tpu.vector_store %arg4[%c0_16, %c0_17], %43 {strides = array<i32>} : memref<32x32xf32, #tpu.memory_space<vmem>>, vector<32x32xf32>,
    return
  }
}

</mosaic_0001>

<bundles_post_ra>
// kernel: tpu_custom_call.1
= control target key start
LH: loop header
LB: loop body
LE: loop exit
PB: predicated region body
PF: predicated region fallthrough
CT: control target
= control target key end

     0   :  { %9 = vsyncpa [#allocation3], 0  ;;  %s1721_s0 = inlined_call_operand.hbm [shape: f32[32,32], index: 0, kind: input, shape index: {}]   ;;  %s1722_s1 = inlined_call_operand.hbm [shape: f32[32,96], index: 1, kind: input, shape index: {}]   ;;  %s1723_s2 = inlined_call_operand.hbm [shape: f32[32,32], index: 2, kind: input, shape index: {}]   ;;  %s1724_s3 = inlined_call_operand.vmem [shape: f32[1,32], index: 3, kind: input, shape index: {}]   ;;  %s1725_s4 = inlined_call_operand.hbm [shape: f32[32,32], index: 4, kind: output, shape index: {}]  }
   0x1   :  { %10 = vsyncpa [#allocation6], 0 }
   0x2   :  { %11 = vsyncpa [#allocation4], 0  ;;  %s1511_s15 = smov [#allocation5]   ;;  %s1512_s17 = smov [#allocation2]  }
   0x3   :  { %s29_s16 = sshll.u32 %s1511_s15, 4  ;;  %s17_s18 = sshll.u32 %s1512_s17, 4  ;;  %s30_s16 = int_to_ptr.vmem [resolvable:$true] %s29_s16  ;;  %s1548_s18 = int_to_ptr.vmem [resolvable:$true] %s17_s18 }
   0x4   :  { %s1417_s21 = scalar_lea.hbm %s1722_s1, 512 }
   0x5   :  { %p1418_p0 = scmp.ne.s32.totalorder %s1722_s1, %s1417_s21  ;;  %p1421_p1 = scmp.lt.u32.totalorder %s1417_s21, %s1722_s1 }
   0x7   :  { %p1423_p2 = pnand %p1421_p1, %p1418_p0 }
   0x9   :  { %1426 = shalt.err (!%p1423_p2)
}
   0xa   :  { %s1427_s26 = scalar_lea.vmem %s30_s16, 512  ;;  %p1432_p4 = scmp.lt.s32.totalorder %s30_s16, %s30_s16 }
   0xb   :  { %p1428_p3 = scmp.ne.s32.totalorder %s30_s16, %s1427_s26  ;;  %p1433_p5 = scmp.lt.s32.totalorder %s1427_s26, %s1427_s26 }
   0xd   :  { %p1434_p6 = por %p1433_p5, %p1432_p4 }
   0xf   :  { %p1435_p7 = pnand %p1434_p6, %p1428_p3 }
  0x11   :  { %1438 = shalt.err (!%p1435_p7)
}
  0x12   :  { %s1513_s27 = smov 128   ;;  %s1514_s28 = smov 8  }
  0x13   :  { %35 = dma.hbm_to_vmem [thread:$0]  %s1722_s1, 512, %s30_s16, [#allocation6], %s1513_s27, %s1513_s27, %s1514_s28  }
  0x14   :  { %s1439_s7 = scalar_lea.hbm %s1721_s0, 512 }
  0x15   :  { %p1440_p8 = scmp.ne.s32.totalorder %s1721_s0, %s1439_s7  ;;  %p1443_p9 = scmp.lt.u32.totalorder %s1439_s7, %s1721_s0 }
  0x17   :  { %p1445_p10 = pnand %p1443_p9, %p1440_p8 }
  0x19   :  { %1448 = shalt.err (!%p1445_p10)
}
  0x1a   :  { %s1449_s12 = scalar_lea.vmem %s1548_s18, 512  ;;  %p1454_p12 = scmp.lt.s32.totalorder %s1548_s18, %s1548_s18 }
  0x1b   :  { %p1450_p11 = scmp.ne.s32.totalorder %s1548_s18, %s1449_s12  ;;  %p1455_p13 = scmp.lt.s32.totalorder %s1449_s12, %s1449_s12 }
  0x1d   :  { %p1456_p0 = por %p1455_p13, %p1454_p12 }
  0x1f   :  { %p1457_p1 = pnand %p1456_p0, %p1450_p11 }
  0x21   :  { %1460 = shalt.err (!%p1457_p1)
}
  0x22   :  { %23 = dma.hbm_to_vmem [thread:$0]  %s1721_s0, 512, %s1548_s18, [#allocation3], %s1513_s27, %s1513_s27, %s1514_s28  }
  0x23   :  { %s1515_s14 = smov [#allocation7]   ;;  %s1461_s19 = scalar_lea.hbm %s1723_s2, 512 }
  0x24   :  { %s41_s15 = sshll.u32 %s1515_s14, 4  ;;  %p1462_p2 = scmp.ne.s32.totalorder %s1723_s2, %s1461_s19  ;;  %s42_s15 = int_to_ptr.vmem [resolvable:$true] %s41_s15 }
  0x25   :  { %p1465_p3 = scmp.lt.u32.totalorder %s1461_s19, %s1723_s2 }
  0x27   :  { %p1467_p4 = pnand %p1465_p3, %p1462_p2 }
  0x29   :  { %1470 = shalt.err (!%p1467_p4)
}
  0x2a   :  { %s1471_s24 = scalar_lea.vmem %s42_s15, 512  ;;  %p1476_p6 = scmp.lt.s32.totalorder %s42_s15, %s42_s15 }
  0x2b   :  { %p1472_p5 = scmp.ne.s32.totalorder %s42_s15, %s1471_s24  ;;  %p1477_p7 = scmp.lt.s32.totalorder %s1471_s24, %s1471_s24 }
  0x2d   :  { %p1478_p8 = por %p1477_p7, %p1476_p6 }
  0x2f   :  { %p1479_p9 = pnand %p1478_p8, %p1472_p5 }
  0x31   :  { %1482 = shalt.err (!%p1479_p9)
}
  0x32   :  { %47 = dma.hbm_to_vmem [thread:$0]  %s1723_s2, 512, %s42_s15, [#allocation6], %s1513_s27, %s1513_s27, %s1514_s28  }
  0x33   :  { %1505 = dma.done.wait [#allocation3], 512  }
  0x34   :  { %1506 = vsyncadd [#allocation3], 4294966784 }
  0x35   :  { %1507 = dma.done.wait [#allocation6], 1024  }
  0x36   :  { %1508 = vsyncadd [#allocation6], 4294966272  ;;  %vm67_vm0 = vcmask 261120   ;;  %v63_v0 = vld [vmem:[#allocation5] sm:$0xff]  ;;  %v64_v1 = vld [vmem:[#allocation5 + $0x8] sm:$0xff]  ;;  %vm171_vm1 = vcmask 130048  }
  0x37   :  { %v65_v2 = vld [vmem:[#allocation5 + $0x10] sm:$0xff]  ;;  %v1277_v3 = vpack.c.bf16 %v64_v1, %v63_v0  ;;  %v66_v4 = vld [vmem:[#allocation5 + $0x18] sm:$0xff]  ;;  %v59_v5 = vld [vmem:[#allocation2] sm:$0xff]  ;;  %s1516_s2 = smov 96   ;;  %s1517_s25 = smov 64  }
  0x38   :  { %v1281_v6 = vpack.c.bf16 %v66_v4, %v65_v2  ;;  %1201 = vmatprep.mubr.msk.f32.mxu1 %vm67_vm0, %v59_v5  ;;  %v60_v7 = vld [vmem:[#allocation2 + $0x8] sm:$0xff]  ;;  %v61_v8 = vld [vmem:[#allocation2 + $0x10] sm:$0xff]  ;;  %v62_v9 = vld [vmem:[#allocation2 + $0x18] sm:$0xff]  ;;  %s1518_s26 = smov 80   ;;  %s1519_s29 = smov 112  }
  0x39   :  { %1278 = vmatprep.subr.bf16.mxu1 %v1277_v3  ;;  %vm1617_vm2 = vmpackc.low %vm171_vm1, %vm171_vm1  ;;  %s1520_s30 = smov 48   ;;  %s1521_s5 = smov 16  }
  0x3a   :  { %1280 = vmatpush3.bf16.msra.mxu1 %v1277_v3  ;;  %s1522_s8 = smov [#allocation8]  }
  0x3b   :  { %1282 = vmatprep.subr.bf16.mxu1 %v1281_v6  ;;  %s1099_s9 = sshll.u32 %s1522_s8, 4  ;;  %s1100_s9 = int_to_ptr.vmem [resolvable:$true] %s1099_s9 }
  0x3c   :  { %p1488_p11 = scmp.lt.s32.totalorder %s1100_s9, %s1100_s9 }
  0x3e   :  { %1284 = vmatpush3.bf16.msra.mxu1 %v1281_v6 }
  0x41   :  { %1202 = vmatmul.mubr.msk.f32.vlgmr.msra.gmra.mrb[0].mxu1 %vm67_vm0, %v60_v7 }
  0x42   :  { %1204 = vmatprep.mubr.msk.f32.mxu1 %vm67_vm0, %v61_v8 }
  0x45   :  { %1205 = vmatmul.mubr.msk.f32.gmra.mrb[2].mxu1 %vm67_vm0, %v62_v9 }
 0x114   :  { %v1203_v10 = vpop.f32.mrb[0].mxu1 }
 0x115   :  { %v146_v11 = vpop.f32.mrb[1].mxu1 }
 0x116   :  { %1211 = vmatprep.mubr.msk.f32.mxu1 %vm171_vm1, %v146_v11  ;;  %v1605_v12 = vpack.i.bf16 %v1203_v10, %v146_v11 }
 0x118   :  { %1346 = vrot.lane.b32.xlu0 %v1605_v12, %s1516_s2  ;;  %v1608_v13 = vpop.f32.mrb[2].mxu1 }
 0x119   :  { %v156_v14 = vpop.f32.mrb[3].mxu1 }
 0x11a   :  { %v1611_v15 = vpack.i.bf16 %v1608_v13, %v156_v14  ;;  %1218 = vmatprep.mubr.msk.f32.mxu0 %vm171_vm1, %v156_v14 }
 0x11c   :  { %1351 = vrot.lane.b32.xlu0 %v1611_v15, %s1516_s2 }
 0x18a   :  { %v1347_v16 = vpop.permute.xlu0 %1346 }
 0x18b   :  { %v1349_v17 = vunpack.i.h.bf16 %v1347_v16  ;;  %v1348_v18 = vunpack.i.l.bf16 %v1347_v16 }
 0x18d   :  { %v1285_v20 = vpack.c.bf16 %v1349_v17, %v1348_v18 }
 0x18e   :  { %v1352_v21 = vpop.permute.xlu0 %1351 }
 0x18f   :  { %v1354_v22 = vunpack.i.h.bf16 %v1352_v21  ;;  %v1353_v23 = vunpack.i.l.bf16 %v1352_v21  ;;  %1287 = vmatprep.subr.msk.bf16.mxu1 %vm1617_vm2, %v1285_v20 }
 0x190   :  { %1290 = vmatpush3.bf16.xpose.msk.msra.mxu1 %vm1617_vm2, %v1285_v20 }
 0x191   :  { %v1291_v24 = vpack.c.bf16 %v1354_v22, %v1353_v23 }
 0x193   :  { %1293 = vmatprep.subr.msk.bf16.mxu0 %vm1617_vm2, %v1291_v24 }
 0x194   :  { %1296 = vmatpush3.bf16.xpose.msk.msra.mxu0 %vm1617_vm2, %v1291_v24 }
 0x197   :  { %1212 = vmatmul.mubr.msk.f32.vlgmr.msra.gmra.mrb[4].mxu1 %vm171_vm1, %v1203_v10 }
 0x19b   :  { %1219 = vmatmul.mubr.msk.f32.vlgmr.msra.gmra.mrb[0].mxu0 %vm171_vm1, %v1608_v13 }
 0x26a   :  { %v1213_v25 = vpop.f32.mrb[4].mxu1 }
 0x26b   :  { %v246_v26 = vpop.f32.mrb[5].mxu1  ;;  %v347_v31 = vsel %vm171_vm1, %v1213_v25, -inf }
 0x26c   :  { %v344_v27 = vsel %vm171_vm1, %v246_v26, -inf }
 0x26d   :  { %345 = vmax.xlane.f32.xlu1 %v344_v27 }
 0x26e   :  { %v1220_v28 = vpop.f32.mrb[0].mxu0 }
 0x26f   :  { %v335_v29 = vpop.f32.mrb[1].mxu0  ;;  %v353_v32 = vsel %vm171_vm1, %v1220_v28, -inf }
 0x270   :  { %v350_v30 = vsel %vm171_vm1, %v335_v29, -inf }
 0x271   :  { %351 = vmax.xlane.f32.xlu0 %v350_v30  ;;  %348 = vmax.xlane.f32.xlu1 %v347_v31 }
 0x275   :  { %354 = vmax.xlane.f32.xlu1 %v353_v32 }
 0x286   :  { %1356 = vrot.lane.b32.xlu1 %v1605_v12, %s1517_s25 }
 0x287   :  { %1361 = vrot.lane.b32.xlu0 %v1611_v15, %s1517_s25 }
 0x28a   :  { %1366 = vrot.lane.b32.xlu1 %v1605_v12, %s1518_s26 }
 0x28b   :  { %653 = vrot.lane.b32.xlu0 %v156_v14, %s1519_s29 }
 0x28e   :  { %1371 = vrot.lane.b32.xlu1 %v1611_v15, %s1518_s26 }
 0x292   :  { %562 = vrot.lane.b32.xlu1 %v146_v11, %s1519_s29 }
 0x296   :  { %564 = vrot.lane.b32.xlu1 %v1203_v10, %s1519_s29 }
 0x2fa   :  { %v346_v33 = vpop.xlane.xlu1 %345 }
 0x2fb   :  { %v356_v34 = vsub.f32 %v246_v26, %v346_v33 }
 0x2fd   :  { %v360_v39 = vmul.f32 1.442695, %v356_v34 }
 0x2fe   :  { %v352_v35 = vpop.xlane.xlu0 %351  ;;  %v349_v36 = vpop.xlane.xlu1 %348 }
 0x2ff   :  { %v357_v37 = vsub.f32 %v1213_v25, %v349_v36  ;;  %v358_v43 = vsub.f32 %v335_v29, %v352_v35 }
 0x301   :  { %v362_v38 = vmul.f32 1.442695, %v357_v37  ;;  %v364_v51 = vmul.f32 1.442695, %v358_v43 }
 0x302   :  { %v355_v40 = vpop.xlane.xlu1 %354  ;;  %v1362_v42 = vpop.permute.xlu0 %1361 }
 0x303   :  { %v359_v41 = vsub.f32 %v1220_v28, %v355_v40  ;;  %1385 = vpow2.f32 %v362_v38  ;;  %v1364_v46 = vunpack.i.h.bf16 %v1362_v42  ;;  %v1363_v47 = vunpack.i.l.bf16 %v1362_v42 }
 0x304   :  { %1387 = vpow2.f32 %v360_v39 }
 0x305   :  { %v366_v44 = vmul.f32 1.442695, %v359_v41  ;;  %v1301_v53 = vpack.c.bf16 %v1364_v46, %v1363_v47 }
 0x306   :  { %v1357_v45 = vpop.permute.xlu1 %1356  ;;  %v654_v22 = vpop.permute.xlu0 %653 }
 0x307   :  { %v1359_v48 = vunpack.i.h.bf16 %v1357_v45  ;;  %v1358_v49 = vunpack.i.l.bf16 %v1357_v45  ;;  %1389 = vpow2.f32 %v366_v44 }
 0x308   :  { %1391 = vpow2.f32 %v364_v51 }
 0x309   :  { %v1297_v50 = vpack.c.bf16 %v1359_v48, %v1358_v49 }
 0x30a   :  { %v1367_v52 = vpop.permute.xlu1 %1366 }
 0x30b   :  { %v1369_v54 = vunpack.i.h.bf16 %v1367_v52  ;;  %v1368_v55 = vunpack.i.l.bf16 %v1367_v52  ;;  %1298 = vmatprep.subr.bf16.mxu1 %v1297_v50 }
 0x30c   :  { %1300 = vmatpush3.bf16.msra.mxu1 %v1297_v50 }
 0x30d   :  { %v1305_v56 = vpack.c.bf16 %v1369_v54, %v1368_v55  ;;  %1302 = vmatprep.subr.bf16.mxu1 %v1301_v53  ;;  %v1386_v57 = vpop.eup %1385 }
 0x30e   :  { %v1372_v58 = vpop.permute.xlu1 %1371  ;;  %v371_v59 = vsel %vm171_vm1, %v1386_v57, 0.0  ;;  %v1388_v60 = vpop.eup %1387 }
 0x30f   :  { %1307 = vmatprep.subr.msk.bf16.mxu0 %vm1617_vm2, %v1305_v56  ;;  %372 = vadd.xlane.f32.xlu1 %v371_v59  ;;  %v368_v62 = vsel %vm171_vm1, %v1388_v60, 0.0  ;;  %v1374_v10 = vunpack.i.h.bf16 %v1372_v58  ;;  %v1373_v11 = vunpack.i.l.bf16 %v1372_v58 }
 0x310   :  { %1310 = vmatpush3.bf16.xpose.msk.msra.mxu0 %vm1617_vm2, %v1305_v56 }
 0x311   :  { %v1390_v63 = vpop.eup %1389  ;;  %v1311_v17 = vpack.c.bf16 %v1374_v10, %v1373_v11  ;;  %v983_v10 = vld [vmem:[#allocation7 + $0x8] sm:$0xff] }
 0x312   :  { %v563_v61 = vpop.permute.xlu1 %562  ;;  %v377_v1 = vsel %vm171_vm1, %v1390_v63, 0.0  ;;  %v1392_v2 = vpop.eup %1391 }
 0x313   :  { %1239 = vmatprep.mubr.msk.f32.mxu0 %vm171_vm1, %v563_v61  ;;  %369 = vadd.xlane.f32.xlu1 %v368_v62  ;;  %v374_v3 = vsel %vm171_vm1, %v1392_v2, 0.0 }
 0x316   :  { %v565_v0 = vpop.permute.xlu1 %564 }
 0x317   :  { %1240 = vmatmul.mubr.msk.f32.vlgmr.msra.gmra.mrb[2].mxu0 %vm171_vm1, %v565_v0  ;;  %378 = vadd.xlane.f32.xlu1 %v377_v1 }
 0x31b   :  { %375 = vadd.xlane.f32.xlu1 %v374_v3 }
 0x32c   :  { %655 = vrot.lane.b32.xlu1 %v1608_v13, %s1519_s29 }
 0x39c   :  { %v373_v4 = vpop.xlane.xlu1 %372 }
 0x39d   :  { %1393 = vrcp.f32 %v373_v4 }
 0x3a0   :  { %v370_v5 = vpop.xlane.xlu1 %369 }
 0x3a1   :  { %1395 = vrcp.f32 %v370_v5 }
 0x3a4   :  { %v379_v6 = vpop.xlane.xlu1 %378 }
 0x3a5   :  { %1397 = vrcp.f32 %v379_v6 }
 0x3a7   :  { %v1394_v8 = vpop.eup %1393 }
 0x3a8   :  { %v376_v7 = vpop.xlane.xlu1 %375  ;;  %v385_v16 = vmul.f32 %v1394_v8, %v1386_v57 }
 0x3a9   :  { %1399 = vrcp.f32 %v376_v7 }
 0x3ab   :  { %v1396_v9 = vpop.eup %1395 }
 0x3ac   :  { %v384_v14 = vmul.f32 %v1396_v9, %v1388_v60  ;;  %v656_v23 = vpop.permute.xlu1 %655  ;;  %v982_v9 = vld [vmem:[#allocation7] sm:$0xff] }
 0x3ad   :  { %v1325_v11 = vpack.c.bf16 %v983_v10, %v982_v9 }
 0x3ae   :  { %1225 = vmatprep.mubr.msk.f32.mxu1 %vm171_vm1, %v384_v14  ;;  %v984_v14 = vld [vmem:[#allocation7 + $0x10] sm:$0xff] }
 0x3af   :  { %1226 = vmatmul.mubr.msk.f32.vlgmr.msra.gmra.mrb[6].mxu1 %vm171_vm1, %v385_v16  ;;  %v1398_v13 = vpop.eup %1397  ;;  %v985_v16 = vld [vmem:[#allocation7 + $0x18] sm:$0xff] }
 0x3b0   :  { %1304 = vmatpush3.bf16.msra.mxu1 %v1301_v53  ;;  %v387_v21 = vmul.f32 %v1398_v13, %v1390_v63 }
 0x3b1   :  { %1313 = vmatprep.subr.msk.bf16.mxu1 %vm1617_vm2, %v1311_v17 }
 0x3b3   :  { %v1400_v18 = vpop.eup %1399 }
 0x3b4   :  { %v386_v20 = vmul.f32 %v1400_v18, %v1392_v2 }
 0x3b6   :  { %1232 = vmatprep.mubr.msk.f32.mxu1 %vm171_vm1, %v386_v20 }
 0x3b7   :  { %1233 = vmatmul.mubr.msk.f32.vlgmr.msra.gmra.mrb[8].mxu1 %vm171_vm1, %v387_v21 }
 0x3b8   :  { %1246 = vmatprep.mubr.msk.f32.mxu1 %vm171_vm1, %v654_v22 }
 0x3b9   :  { %1316 = vmatpush3.bf16.xpose.msk.msra.mxu1 %vm1617_vm2, %v1311_v17  ;;  %v1329_v17 = vpack.c.bf16 %v985_v16, %v984_v14 }
 0x3c0   :  { %1247 = vmatmul.mubr.msk.f32.vlgmr.msra.gmra.mrb[10].mxu1 %vm171_vm1, %v656_v23 }
 0x3ea   :  { %v1241_v24 = vpop.f32.mrb[2].mxu0 }
 0x3eb   :  { %v644_v25 = vpop.f32.mrb[3].mxu0  ;;  %v747_v26 = vsel %vm171_vm1, %v1241_v24, -inf }
 0x3ec   :  { %748 = vmax.xlane.f32.xlu1 %v747_v26  ;;  %v744_v27 = vsel %vm171_vm1, %v644_v25, -inf }
 0x3ed   :  { %745 = vmax.xlane.f32.xlu0 %v744_v27 }
 0x479   :  { %v749_v19 = vpop.xlane.xlu1 %748 }
 0x47a   :  { %v746_v28 = vpop.xlane.xlu0 %745  ;;  %v757_v34 = vsub.f32 %v1241_v24, %v749_v19 }
 0x47b   :  { %v756_v29 = vsub.f32 %v644_v25, %v746_v28 }
 0x47c   :  { %v762_v38 = vmul.f32 1.442695, %v757_v34 }
 0x47d   :  { %v760_v30 = vmul.f32 1.442695, %v756_v29 }
 0x47f   :  { %1401 = vpow2.f32 %v760_v30  ;;  %v1140_v30 = vld [vmem:[%s1724_s3] ss:$0 sm:$0xff]  ;;  %s1483_s3 = scalar_lea.vmem %s1100_s9, 512 }
 0x480   :  { %1403 = vpow2.f32 %v762_v38  ;;  %p1484_p10 = scmp.ne.s32.totalorder %s1100_s9, %s1483_s3  ;;  %p1489_p12 = scmp.lt.s32.totalorder %s1483_s3, %s1483_s3 }
 0x482   :  { %v1667_v31 = vpop.f32.mrb[6].mxu1  ;;  %p1490_p13 = por %p1489_p12, %p1488_p11 }
 0x483   :  { %v1669_v32 = vpop.f32.mrb[7].mxu1 }
 0x484   :  { %p1491_p0 = pnand %p1490_p13, %p1484_p10 }
 0x489   :  { %v1402_v33 = vpop.eup %1401 }
 0x48a   :  { %v768_v35 = vsel %vm171_vm1, %v1402_v33, 0.0  ;;  %v1672_v36 = vpop.f32.mrb[8].mxu1  ;;  %v1404_v43 = vpop.eup %1403 }
 0x48b   :  { %769 = vadd.xlane.f32.xlu1 %v768_v35  ;;  %v1674_v37 = vpop.f32.mrb[9].mxu1  ;;  %v771_v44 = vsel %vm171_vm1, %v1404_v43, 0.0 }
 0x493   :  { %v1248_v39 = vpop.f32.mrb[10].mxu1 }
 0x494   :  { %v735_v40 = vpop.f32.mrb[11].mxu1  ;;  %v753_v42 = vsel %vm171_vm1, %v1248_v39, -inf }
 0x495   :  { %v750_v41 = vsel %vm171_vm1, %v735_v40, -inf }
 0x496   :  { %751 = vmax.xlane.f32.xlu0 %v750_v41 }
 0x49a   :  { %754 = vmax.xlane.f32.xlu0 %v753_v42 }
 0x49e   :  { %772 = vadd.xlane.f32.xlu0 %v771_v44 }
 0x518   :  { %v770_v45 = vpop.xlane.xlu1 %769 }
 0x519   :  { %1405 = vrcp.f32 %v770_v45 }
 0x523   :  { %v1406_v46 = vpop.eup %1405  ;;  %v752_v47 = vpop.xlane.xlu0 %751 }
 0x524   :  { %v784_v48 = vmul.f32 %v1406_v46, %v1402_v33  ;;  %v758_v49 = vsub.f32 %v735_v40, %v752_v47 }
 0x526   :  { %1253 = vmatprep.mubr.msk.f32.mxu0 %vm171_vm1, %v784_v48  ;;  %v764_v50 = vmul.f32 1.442695, %v758_v49 }
 0x527   :  { %v755_v51 = vpop.xlane.xlu0 %754 }
 0x528   :  { %1407 = vpow2.f32 %v764_v50  ;;  %v759_v52 = vsub.f32 %v1248_v39, %v755_v51 }
 0x52a   :  { %v766_v53 = vmul.f32 1.442695, %v759_v52 }
 0x52b   :  { %v773_v58 = vpop.xlane.xlu0 %772 }
 0x52c   :  { %1409 = vpow2.f32 %v766_v53 }
 0x52d   :  { %1411 = vrcp.f32 %v773_v58 }
 0x532   :  { %v1408_v54 = vpop.eup %1407 }
 0x533   :  { %v774_v55 = vsel %vm171_vm1, %v1408_v54, 0.0 }
 0x534   :  { %775 = vadd.xlane.f32.xlu1 %v774_v55 }
 0x536   :  { %v1410_v56 = vpop.eup %1409 }
 0x537   :  { %v777_v57 = vsel %vm171_vm1, %v1410_v56, 0.0  ;;  %v1412_v1 = vpop.eup %1411 }
 0x538   :  { %778 = vadd.xlane.f32.xlu0 %v777_v57 }
 0x545   :  { %1376 = vrot.lane.b32.xlu1 %v1605_v12, %s1520_s30  ;;  %v785_v12 = vmul.f32 %v1412_v1, %v1404_v43 }
 0x54e   :  { %1381 = vrot.lane.b32.xlu0 %v1611_v15, %s1520_s30 }
 0x5c1   :  { %v776_v59 = vpop.xlane.xlu1 %775 }
 0x5c2   :  { %1413 = vrcp.f32 %v776_v59 }
 0x5c5   :  { %v1377_v60 = vpop.permute.xlu1 %1376  ;;  %v779_v61 = vpop.xlane.xlu0 %778 }
 0x5c6   :  { %v1379_v62 = vunpack.i.h.bf16 %v1377_v60  ;;  %v1378_v63 = vunpack.i.l.bf16 %v1377_v60  ;;  %1415 = vrcp.f32 %v779_v61 }
 0x5c8   :  { %v1317_v0 = vpack.c.bf16 %v1379_v62, %v1378_v63 }
 0x5c9   :  { %v1382_v2 = vpop.permute.xlu0 %1381 }
 0x5ca   :  { %v1384_v3 = vunpack.i.h.bf16 %v1382_v2  ;;  %v1383_v4 = vunpack.i.l.bf16 %v1382_v2  ;;  %1318 = vmatprep.subr.bf16.mxu0 %v1317_v0 }
 0x5cb   :  { %1320 = vmatpush3.bf16.msra.mxu0 %v1317_v0 }
 0x5cc   :  { %v1414_v5 = vpop.eup %1413  ;;  %v1321_v6 = vpack.c.bf16 %v1384_v3, %v1383_v4  ;;  %1326 = vmatprep.subr.bf16.mxu0 %v1325_v11 }
 0x5cd   :  { %v786_v15 = vmul.f32 %v1414_v5, %v1408_v54 }
 0x5ce   :  { %1254 = vmatmul.mubr.msk.f32.vlgmr.msra.gmra.mrb[4].mxu0 %vm171_vm1, %v785_v12  ;;  %1322 = vmatprep.subr.bf16.mxu1 %v1321_v6 }
 0x5cf   :  { %1324 = vmatpush3.bf16.msra.mxu1 %v1321_v6  ;;  %1260 = vmatprep.mubr.msk.f32.mxu1 %vm171_vm1, %v786_v15 }
 0x5d0   :  { %v1416_v7 = vpop.eup %1415  ;;  %1328 = vmatpush3.bf16.msra.mxu0 %v1325_v11 }
 0x5d1   :  { %v787_v8 = vmul.f32 %v1416_v7, %v1410_v56  ;;  %1330 = vmatprep.subr.bf16.mxu0 %v1329_v17 }
 0x5d3   :  { %1261 = vmatmul.mubr.msk.f32.vlgmr.msra.gmra.mrb[12].mxu1 %vm171_vm1, %v787_v8 }
 0x5d4   :  { %1332 = vmatpush3.bf16.msra.mxu0 %v1329_v17 }
 0x6a1   :  { %v1255_v13 = vpop.f32.mrb[4].mxu0 }
 0x6a2   :  { %v866_v18 = vpop.f32.mrb[5].mxu0 }
 0x6a3   :  { %966 = vrot.lane.b32.xlu1 %v866_v18, %s1521_s5 }
 0x6a6   :  { %v1262_v20 = vpop.f32.mrb[12].mxu1 }
 0x6a7   :  { %968 = vrot.lane.b32.xlu1 %v1255_v13, %s1521_s5  ;;  %v953_v21 = vpop.f32.mrb[13].mxu1 }
 0x6a8   :  { %970 = vrot.lane.b32.xlu0 %v953_v21, %s1521_s5 }
 0x6ab   :  { %972 = vrot.lane.b32.xlu1 %v1262_v20, %s1521_s5 }
 0x715   :  { %v967_v22 = vpop.permute.xlu1 %966 }
 0x716   :  { %v978_v23 = vsel %vm171_vm1, %v1669_v32, %v967_v22 }
 0x717   :  { %1271 = vmatprep.mubr.msk.f32.mxu0 %vm67_vm0, %v978_v23 }
 0x719   :  { %v969_v24 = vpop.permute.xlu1 %968 }
 0x71a   :  { %v979_v25 = vsel %vm171_vm1, %v1667_v31, %v969_v24  ;;  %v971_v26 = vpop.permute.xlu0 %970 }
 0x71b   :  { %v980_v27 = vsel %vm171_vm1, %v1674_v37, %v971_v26  ;;  %1272 = vmatmul.mubr.msk.f32.vlgmr.msra.gmra.mrb[6].mxu0 %vm67_vm0, %v979_v25 }
 0x71c   :  { %1274 = vmatprep.mubr.msk.f32.mxu0 %vm67_vm0, %v980_v27 }
 0x71d   :  { %v973_v28 = vpop.permute.xlu1 %972 }
 0x71e   :  { %v981_v29 = vsel %vm171_vm1, %v1672_v36, %v973_v28 }
 0x71f   :  { %1275 = vmatmul.mubr.msk.f32.gmra.mrb[8].mxu0 %vm67_vm0, %v981_v29 }
 0x7ee   :  { %v1273_v32 = vpop.f32.mrb[6].mxu0 }
 0x7ef   :  { %v1077_v31 = vadd.f32 %v1273_v32, %v1140_v30  ;;  %v1071_v19 = vpop.f32.mrb[7].mxu0 }
 0x7f0   :  { %v1072_v33 = vadd.f32 %v1140_v30, %v1071_v19 }
 0x7f1   :  { %1091 = vst.msk [vmem:[#allocation8 + $0x8] sm:$0xff] %vm67_vm0, %v1077_v31 }
 0x7f2   :  { %1090 = vst.msk [vmem:[#allocation8] sm:$0xff] %vm67_vm0, %v1072_v33  ;;  %v1276_v34 = vpop.f32.mrb[8].mxu0 }
 0x7f3   :  { %v1087_v35 = vadd.f32 %v1276_v34, %v1140_v30  ;;  %v1081_v37 = vpop.f32.mrb[9].mxu0 }
 0x7f4   :  { %v1082_v36 = vadd.f32 %v1140_v30, %v1081_v37 }
 0x7f5   :  { %1093 = vst.msk [vmem:[#allocation8 + $0x18] sm:$0xff] %vm67_vm0, %v1087_v35 }
 0x7f6   :  { %1092 = vst.msk [vmem:[#allocation8 + $0x10] sm:$0xff] %vm67_vm0, %v1082_v36 }
 0x7f7   :  { %1494 = shalt.err (!%p1491_p0)
}
 0x7f8   :  { %s1495_s12 = scalar_lea.hbm %s1725_s4, 512 }
 0x7f9   :  { %p1496_p1 = scmp.ne.s32.totalorder %s1725_s4, %s1495_s12  ;;  %p1499_p2 = scmp.lt.u32.totalorder %s1495_s12, %s1725_s4 }
 0x7fb   :  { %p1501_p3 = pnand %p1499_p2, %p1496_p1 }
 0x7fd   :  { %1504 = shalt.err (!%p1501_p3)
}
 0x7fe   :  { %1105 = dma.vmem_to_hbm [thread:$0]  %s1100_s9, 512, %s1725_s4, [#allocation4], %s1513_s27, %s1513_s27, %s1514_s28  }
 0x7ff   :  { %1509 = dma.done.wait [#allocation4], 512  }
 0x800   :  { %1510 = vsyncadd [#allocation4], 4294966784 }
 0x801   :  { %1109 = vsyncpa [#allocation3], 1 }
 0x802   :  { %1110 = vsyncpa [#allocation6], 1 }
 0x803   :  { %1111 = vsyncpa [#allocation4], 1 }

</bundles_post_ra>
